<compile_context>
chip_gen: v6e
topology: v6e:2x2x1
jax: 0.10.0
libtpu: 0.0.40
codegen_flags: <defaults>
</compile_context>

<pallas_src>
import functools

import jax
import jax.numpy as jnp
from jax.experimental import pallas as pl
from jax.experimental.pallas import tpu as pltpu

HIDDEN = 100
HIDDEN_PAD = 128           # hidden / class dims zero-padded to a full 128-lane width
N_HIDDEN_LAYERS = 8        # eight Linear(..,100)+ReLU blocks before the head
DEFAULT_TILE_B = 1024      # batch tile (M of every MXU dot); multiple of 16
MAX_TILE_B = 2048          # keeps double-buffered tiles inside default scoped VMEM (v5e too)
NEG_FILL = -1e30           # head-bias fill for padded class columns (=> exp() == 0)


def _round_up(x, m):
    return (x + m - 1) // m * m


def _cdiv(a, b):
    return (a + b - 1) // b


def _mlp_kernel(acc_dtype,
                x_ref, w1_ref, b1_ref, wh_ref, bh_ref, wo_ref, bo_ref,
                out_ref):
    """Fused 9-layer MLP + softmax for one (tile_b, input_size) activation tile.

    acc_dtype controls the bias-add/ReLU elementwise phase of the hidden layers:
      float32  -> safe everywhere (v5e has no bf16 VALU), matches the reference.
      bfloat16 -> fewer VPU passes / half the vreg traffic on v6e / v7x.
    """

    def hidden(h, w, b):
        a = jnp.dot(h, w, preferred_element_type=acc_dtype) + b.astype(acc_dtype)
        return jnp.maximum(a, 0.0).astype(jnp.bfloat16)

    h = hidden(x_ref[...], w1_ref[...], b1_ref[...])
    for layer in range(N_HIDDEN_LAYERS - 1):          # statically unrolled
        h = hidden(h, wh_ref[layer], bh_ref[layer])

    # Head (always f32). Padded class columns already carry NEG_FILL via bo.
    logits = jnp.dot(h, wo_ref[...], preferred_element_type=jnp.float32) + bo_ref[...]

    m = jnp.max(logits, axis=1, keepdims=True)
    e = jnp.exp(logits - m)
    denom = jnp.sum(e, axis=1, keepdims=True)
    # Exact division (pl.reciprocal(approx=True) is only ~bf16-accurate).
    out_ref[...] = (e / denom).astype(out_ref.dtype)


def feedforward_pallas(x, params, num_classes, *, tile_b=DEFAULT_TILE_B,
                       bf16_hidden=False, out_dtype=jnp.float32):
    """x: (B, input_size). params: (w1, b1, wh, bh, wo, bo) from init_params."""
    w1, b1, wh, bh, wo, bo = params
    batch, input_size = x.shape

    # Batch tile: multiple of 16, capped for VMEM, and capped again so the batch
    # grid has >= 2 steps whenever the batch allows it (v7x megacore sharding +
    # DMA/compute overlap on all generations).
    tile_b = _round_up(max(16, min(tile_b, MAX_TILE_B)), 16)
    tile_b = min(tile_b, max(16, _round_up(_cdiv(batch, 2), 16)))

    padded_batch = _round_up(batch, tile_b)
    xb = x.astype(jnp.bfloat16)            # halve input DMA bytes; MXU wants bf16 anyway
    if padded_batch != batch:
        xb = jnp.pad(xb, ((0, padded_batch - batch), (0, 0)))  # zero rows, sliced off below

    n_hid = N_HIDDEN_LAYERS - 1
    grid = (padded_batch // tile_b,)
    acc_dtype = jnp.bfloat16 if bf16_hidden else jnp.float32

    out_padded = pl.pallas_call(
        functools.partial(_mlp_kernel, acc_dtype),
        out_shape=jax.ShapeDtypeStruct((padded_batch, HIDDEN_PAD), out_dtype),
        grid=grid,
        in_specs=[
            pl.BlockSpec((tile_b, input_size), lambda i: (i, 0)),               # x (bf16)
            pl.BlockSpec((input_size, HIDDEN_PAD), lambda i: (0, 0)),           # w1 (bf16)
            pl.BlockSpec((1, HIDDEN_PAD), lambda i: (0, 0)),                    # b1 (f32)
            pl.BlockSpec((n_hid, HIDDEN_PAD, HIDDEN_PAD), lambda i: (0, 0, 0)), # wh (bf16)
            pl.BlockSpec((n_hid, 1, HIDDEN_PAD), lambda i: (0, 0, 0)),          # bh (f32)
            pl.BlockSpec((HIDDEN_PAD, HIDDEN_PAD), lambda i: (0, 0)),           # wo (bf16)
            pl.BlockSpec((1, HIDDEN_PAD), lambda i: (0, 0)),                    # bo (f32, -1e30 pad)
        ],
        out_specs=pl.BlockSpec((tile_b, HIDDEN_PAD), lambda i: (i, 0)),
        compiler_params=pltpu.CompilerParams(
            dimension_semantics=("parallel",)),
    )(xb, w1, b1, wh, bh, wo, bo)

    # Glue for spec parity: strip batch padding + the padded class lanes.
    # A consumer that accepts the 128-wide padded block can skip this slice.
    return out_padded[:batch, :num_classes]


def init_params(key, input_size, num_classes):
    """PyTorch-style Linear init, padded to 128-wide hidden/class dims.

    Weights are stored bf16 (MXU inputs); biases stay f32. Padded hidden
    rows/cols and biases are zero, so padded lanes stay exactly 0 through every
    ReLU layer. The head bias' padded class columns are NEG_FILL so the softmax
    mask is free (exp() == 0) inside the kernel.
    """
    layer_dims = ([(input_size, HIDDEN)]
                  + [(HIDDEN, HIDDEN)] * (N_HIDDEN_LAYERS - 1)
                  + [(HIDDEN, num_classes)])
    ws, bs = [], []
    for idx, (fan_in, fan_out) in enumerate(layer_dims):
        key, kw, kb = jax.random.split(key, 3)
        bound = float(fan_in) ** -0.5
        w = jax.random.uniform(kw, (fan_in, fan_out), jnp.float32, -bound, bound)
        b = jax.random.uniform(kb, (fan_out,), jnp.float32, -bound, bound)
        in_pad = fan_in if fan_in == input_size else HIDDEN_PAD
        is_head = idx == len(layer_dims) - 1
        fill = NEG_FILL if is_head else 0.0
        w_p = jnp.zeros((in_pad, HIDDEN_PAD), jnp.float32).at[:fan_in, :fan_out].set(w)
        b_p = jnp.full((1, HIDDEN_PAD), fill, jnp.float32).at[0, :fan_out].set(b)
        ws.append(w_p.astype(jnp.bfloat16))
        bs.append(b_p)
    w1, b1 = ws[0], bs[0]
    wh = jnp.stack(ws[1:N_HIDDEN_LAYERS])   # (7, 128, 128) bf16
    bh = jnp.stack(bs[1:N_HIDDEN_LAYERS])   # (7, 1, 128)   f32
    wo, bo = ws[-1], bs[-1]
    return (w1, b1, wh, bh, wo, bo)


def feedforward_reference(x, params, num_classes):
    """Plain-JAX reference using the same bf16 weights / f32 elementwise path."""
    w1, b1, wh, bh, wo, bo = params

    def hidden(h, w, b):
        a = jnp.dot(h, w, preferred_element_type=jnp.float32) + b
        return jnp.maximum(a, 0.0).astype(jnp.bfloat16)

    h = hidden(x.astype(jnp.bfloat16), w1, b1)
    for layer in range(N_HIDDEN_LAYERS - 1):
        h = hidden(h, wh[layer], bh[layer])
    logits = (jnp.dot(h, wo, preferred_element_type=jnp.float32) + bo)[:, :num_classes]
    return jax.nn.softmax(logits, axis=1)


if __name__ == "__main__":
    input_size = 64
    num_classes = 10

    key = jax.random.PRNGKey(0)
    key, kx1, kx2 = jax.random.split(key, 3)
    params = init_params(key, input_size, num_classes)

    # Case 1: batch not a multiple of the tile (exercises padding; default tile
    # gets clamped so the grid still has 2 steps).
    batch1 = 20
    x1 = jax.random.normal(kx1, (batch1, input_size), jnp.float32)
    ref1 = feedforward_reference(x1, params, num_classes)
    out1 = jax.block_until_ready(feedforward_pallas(x1, params, num_classes))
    assert out1.shape == (batch1, num_classes)
    assert bool(jnp.all(jnp.isfinite(out1)))
    assert jnp.allclose(jnp.sum(out1, axis=1), 1.0, atol=1e-3)
    assert jnp.allclose(out1, ref1, atol=2e-3, rtol=2e-3)

    # Case 2: larger batch with an explicit small tile (multi-step grid path).
    batch2 = 200
    x2 = jax.random.normal(kx2, (batch2, input_size), jnp.float32)
    ref2 = feedforward_reference(x2, params, num_classes)
    out2 = jax.block_until_ready(
        feedforward_pallas(x2, params, num_classes, tile_b=64))
    assert out2.shape == (batch2, num_classes)
    assert jnp.allclose(jnp.sum(out2, axis=1), 1.0, atol=1e-3)
    assert jnp.allclose(out2, ref2, atol=2e-3, rtol=2e-3)

    # Case 3: bf16 elementwise hidden path (v6e/v7x optimization). Softmax stays
    # f32 with exact division, so rows still sum to 1.
    out3 = jax.block_until_ready(
        feedforward_pallas(x1, params, num_classes, bf16_hidden=True))
    assert out3.shape == (batch1, num_classes)
    assert bool(jnp.all(jnp.isfinite(out3)))
    assert jnp.allclose(jnp.sum(out3, axis=1), 1.0, atol=1e-2)

    print("KERNEL_OK")
</pallas_src>

<mosaic_0001>
module attributes {stable_mosaic.version = 11 : i64} {
  func.func @_mlp_kernel(%arg0: i32, %arg1: memref<16x64xbf16, #tpu.memory_space<vmem>>, %arg2: memref<64x128xbf16, #tpu.memory_space<vmem>>, %arg3: memref<1x128xf32, #tpu.memory_space<vmem>>, %arg4: memref<7x128x128xbf16, #tpu.memory_space<vmem>>, %arg5: memref<7x1x128xf32, #tpu.memory_space<vmem>>, %arg6: memref<128x128xbf16, #tpu.memory_space<vmem>>, %arg7: memref<1x128xf32, #tpu.memory_space<vmem>>, %arg8: memref<16x128xf32, #tpu.memory_space<vmem>>) attributes {dimension_semantics = [#tpu.dimension_semantics<parallel>], iteration_bounds = array<i64: 2>, scalar_prefetch = 0 : i64, scratch_operands = 0 : i64, tpu.core_type = #tpu.core_type<tc>, window_params = [{transform_indices = @transform_0, window_bounds = array<i64: 16, 64>}, {pipeline_mode = #tpu.pipeline_mode<synchronous>, transform_indices = @transform_1, window_bounds = array<i64: 64, 128>}, {pipeline_mode = #tpu.pipeline_mode<synchronous>, transform_indices = @transform_2, window_bounds = array<i64: 1, 128>}, {pipeline_mode = #tpu.pipeline_mode<synchronous>, transform_indices = @transform_3, window_bounds = array<i64: 7, 128, 128>}, {pipeline_mode = #tpu.pipeline_mode<synchronous>, transform_indices = @transform_4, window_bounds = array<i64: 7, 1, 128>}, {pipeline_mode = #tpu.pipeline_mode<synchronous>, transform_indices = @transform_5, window_bounds = array<i64: 128, 128>}, {pipeline_mode = #tpu.pipeline_mode<synchronous>, transform_indices = @transform_6, window_bounds = array<i64: 1, 128>}, {transform_indices = @transform_7, window_bounds = array<i64: 16, 128>}]} {
    %c0 = arith.constant 0 : index
    %c0_0 = arith.constant 0 : index
    %0 = vector.load %arg1[%c0, %c0_0] : memref<16x64xbf16, #tpu.memory_space<vmem>>, vector<16x64xbf16>
    %c0_1 = arith.constant 0 : index
    %c0_2 = arith.constant 0 : index
    %1 = vector.load %arg2[%c0_1, %c0_2] : memref<64x128xbf16, #tpu.memory_space<vmem>>, vector<64x128xbf16>
    %c0_3 = arith.constant 0 : index
    %c0_4 = arith.constant 0 : index
    %2 = vector.load %arg3[%c0_3, %c0_4] : memref<1x128xf32, #tpu.memory_space<vmem>>, vector<1x128xf32>
    %cst = arith.constant dense<0.000000e+00> : vector<16x128xf32>
    %3 = tpu.matmul %0, %1, %cst {dimension_numbers = #tpu.dot_dimension_numbers<[1], [0], [0], [1], [0, 0, 1, 1], [], []>} : vector<16x64xbf16>, vector<64x128xbf16>, vector<16x128xf32> -> vector<16x128xf32>
    %4 = vector.broadcast %2 : vector<1x128xf32> to vector<16x128xf32>
    %5 = arith.addf %3, %4 : vector<16x128xf32>
    %cst_5 = arith.constant 0.000000e+00 : f32
    %6 = vector.broadcast %cst_5 : f32 to vector<16x128xf32>
    %7 = arith.maximumf %5, %6 : vector<16x128xf32>
    %8 = arith.truncf %7 : vector<16x128xf32> to vector<16x128xbf16>
    %c0_6 = arith.constant 0 : index
    %c0_7 = arith.constant 0 : index
    %c0_8 = arith.constant 0 : index
    %9 = vector.load %arg4[%c0_6, %c0_7, %c0_8] : memref<7x128x128xbf16, #tpu.memory_space<vmem>>, vector<1x128x128xbf16>
    %10 = vector.shape_cast %9 : vector<1x128x128xbf16> to vector<128x128xbf16>
    %c0_9 = arith.constant 0 : index
    %c0_10 = arith.constant 0 : index
    %c0_11 = arith.constant 0 : index
    %11 = vector.load %arg5[%c0_9, %c0_10, %c0_11] : memref<7x1x128xf32, #tpu.memory_space<vmem>>, vector<1x1x128xf32>
    %12 = vector.shape_cast %11 : vector<1x1x128xf32> to vector<1x128xf32>
    %cst_12 = arith.constant dense<0.000000e+00> : vector<16x128xf32>
    %13 = tpu.matmul %8, %10, %cst_12 {dimension_numbers = #tpu.dot_dimension_numbers<[1], [0], [0], [1], [0, 0, 1, 1], [], []>} : vector<16x128xbf16>, vector<128x128xbf16>, vector<16x128xf32> -> vector<16x128xf32>
    %14 = vector.broadcast %12 : vector<1x128xf32> to vector<16x128xf32>
    %15 = arith.addf %13, %14 : vector<16x128xf32>
    %cst_13 = arith.constant 0.000000e+00 : f32
    %16 = vector.broadcast %cst_13 : f32 to vector<16x128xf32>
    %17 = arith.maximumf %15, %16 : vector<16x128xf32>
    %18 = arith.truncf %17 : vector<16x128xf32> to vector<16x128xbf16>
    %c1 = arith.constant 1 : index
    %c0_14 = arith.constant 0 : index
    %c0_15 = arith.constant 0 : index
    %19 = vector.load %arg4[%c1, %c0_14, %c0_15] : memref<7x128x128xbf16, #tpu.memory_space<vmem>>, vector<1x128x128xbf16>
    %20 = vector.shape_cast %19 : vector<1x128x128xbf16> to vector<128x128xbf16>
    %c1_16 = arith.constant 1 : index
    %c0_17 = arith.constant 0 : index
    %c0_18 = arith.constant 0 : index
    %21 = vector.load %arg5[%c1_16, %c0_17, %c0_18] : memref<7x1x128xf32, #tpu.memory_space<vmem>>, vector<1x1x128xf32>
    %22 = vector.shape_cast %21 : vector<1x1x128xf32> to vector<1x128xf32>
    %cst_19 = arith.constant dense<0.000000e+00> : vector<16x128xf32>
    %23 = tpu.matmul %18, %20, %cst_19 {dimension_numbers = #tpu.dot_dimension_numbers<[1], [0], [0], [1], [0, 0, 1, 1], [], []>} : vector<16x128xbf16>, vector<128x128xbf16>, vector<16x128xf32> -> vector<16x128xf32>
    %24 = vector.broadcast %22 : vector<1x128xf32> to vector<16x128xf32>
    %25 = arith.addf %23, %24 : vector<16x128xf32>
    %cst_20 = arith.constant 0.000000e+00 : f32
    %26 = vector.broadcast %cst_20 : f32 to vector<16x128xf32>
    %27 = arith.maximumf %25, %26 : vector<16x128xf32>
    %28 = arith.truncf %27 : vector<16x128xf32> to vector<16x128xbf16>
    %c2 = arith.constant 2 : index
    %c0_21 = arith.constant 0 : index
    %c0_22 = arith.constant 0 : index
    %29 = vector.load %arg4[%c2, %c0_21, %c0_22] : memref<7x128x128xbf16, #tpu.memory_space<vmem>>, vector<1x128x128xbf16>
    %30 = vector.shape_cast %29 : vector<1x128x128xbf16> to vector<128x128xbf16>
    %c2_23 = arith.constant 2 : index
    %c0_24 = arith.constant 0 : index
    %c0_25 = arith.constant 0 : index
    %31 = vector.load %arg5[%c2_23, %c0_24, %c0_25] : memref<7x1x128xf32, #tpu.memory_space<vmem>>, vector<1x1x128xf32>
    %32 = vector.shape_cast %31 : vector<1x1x128xf32> to vector<1x128xf32>
    %cst_26 = arith.constant dense<0.000000e+00> : vector<16x128xf32>
    %33 = tpu.matmul %28, %30, %cst_26 {dimension_numbers = #tpu.dot_dimension_numbers<[1], [0], [0], [1], [0, 0, 1, 1], [], []>} : vector<16x128xbf16>, vector<128x128xbf16>, vector<16x128xf32> -> vector<16x128xf32>
    %34 = vector.broadcast %32 : vector<1x128xf32> to vector<16x128xf32>
    %35 = arith.addf %33, %34 : vector<16x128xf32>
    %cst_27 = arith.constant 0.000000e+00 : f32
    %36 = vector.broadcast %cst_27 : f32 to vector<16x128xf32>
    %37 = arith.maximumf %35, %36 : vector<16x128xf32>
    %38 = arith.truncf %37 : vector<16x128xf32> to vector<16x128xbf16>
    %c3 = arith.constant 3 : index
    %c0_28 = arith.constant 0 : index
    %c0_29 = arith.constant 0 : index
    %39 = vector.load %arg4[%c3, %c0_28, %c0_29] : memref<7x128x128xbf16, #tpu.memory_space<vmem>>, vector<1x128x128xbf16>
    %40 = vector.shape_cast %39 : vector<1x128x128xbf16> to vector<128x128xbf16>
    %c3_30 = arith.constant 3 : index
    %c0_31 = arith.constant 0 : index
    %c0_32 = arith.constant 0 : index
    %41 = vector.load %arg5[%c3_30, %c0_31, %c0_32] : memref<7x1x128xf32, #tpu.memory_space<vmem>>, vector<1x1x128xf32>
    %42 = vector.shape_cast %41 : vector<1x1x128xf32> to vector<1x128xf32>
    %cst_33 = arith.constant dense<0.000000e+00> : vector<16x128xf32>
    %43 = tpu.matmul %38, %40, %cst_33 {dimension_numbers = #tpu.dot_dimension_numbers<[1], [0], [0], [1], [0, 0, 1, 1], [], []>} : vector<16x128xbf16>, vector<128x128xbf16>, vector<16x128xf32> -> vector<16x128xf32>
    %44 = vector.broadcast %42 : vector<1x128xf32> to vector<16x128xf32>
    %45 = arith.addf %43, %44 : vector<16x128xf32>
    %cst_34 = arith.constant 0.000000e+00 : f32
    %46 = vector.broadcast %cst_34 : f32 to vector<16x128xf32>
    %47 = arith.maximumf %45, %46 : vector<16x128xf32>
    %48 = arith.truncf %47 : vector<16x128xf32> to vector<16x128xbf16>
    %c4 = arith.constant 4 : index
    %c0_35 = arith.constant 0 : index
    %c0_36 = arith.constant 0 : index
    %49 = vector.load %arg4[%c4, %c0_35, %c0_36] : memref<7x128x128xbf16, #tpu.memory_space<vmem>>, vector<1x128x128xbf16>
    %50 = vector.shape_cast %49 : vector<1x128x128xbf16> to vector<128x128xbf16>
    %c4_37 = arith.constant 4 : index
    %c0_38 = arith.constant 0 : index
    %c0_39 = arith.constant 0 : index
    %51 = vector.load %arg5[%c4_37, %c0_38, %c0_39] : memref<7x1x128xf32, #tpu.memory_space<vmem>>, vector<1x1x128xf32>
    %52 = vector.shape_cast %51 : vector<1x1x128xf32> to vector<1x128xf32>
    %cst_40 = arith.constant dense<0.000000e+00> : vector<16x128xf32>
    %53 = tpu.matmul %48, %50, %cst_40 {dimension_numbers = #tpu.dot_dimension_numbers<[1], [0], [0], [1], [0, 0, 1, 1], [], []>} : vector<16x128xbf16>, vector<128x128xbf16>, vector<16x128xf32> -> vector<16x128xf32>
    %54 = vector.broadcast %52 : vector<1x128xf32> to vector<16x128xf32>
    %55 = arith.addf %53, %54 : vector<16x128xf32>
    %cst_41 = arith.constant 0.000000e+00 : f32
    %56 = vector.broadcast %cst_41 : f32 to vector<16x128xf32>
    %57 = arith.maximumf %55, %56 : vector<16x128xf32>
    %58 = arith.truncf %57 : vector<16x128xf32> to vector<16x128xbf16>
    %c5 = arith.constant 5 : index
    %c0_42 = arith.constant 0 : index
    %c0_43 = arith.constant 0 : index
    %59 = vector.load %arg4[%c5, %c0_42, %c0_43] : memref<7x128x128xbf16, #tpu.memory_space<vmem>>, vector<1x128x128xbf16>
    %60 = vector.shape_cast %59 : vector<1x128x128xbf16> to vector<128x128xbf16>
    %c5_44 = arith.constant 5 : index
    %c0_45 = arith.constant 0 : index
    %c0_46 = arith.constant 0 : index
    %61 = vector.load %arg5[%c5_44, %c0_45, %c0_46] : memref<7x1x128xf32, #tpu.memory_space<vmem>>, vector<1x1x128xf32>
    %62 = vector.shape_cast %61 : vector<1x1x128xf32> to vector<1x128xf32>
    %cst_47 = arith.constant dense<0.000000e+00> : vector<16x128xf32>
    %63 = tpu.matmul %58, %60, %cst_47 {dimension_numbers = #tpu.dot_dimension_numbers<[1], [0], [0], [1], [0, 0, 1, 1], [], []>} : vector<16x128xbf16>, vector<128x128xbf16>, vector<16x128xf32> -> vector<16x128xf32>
    %64 = vector.broadcast %62 : vector<1x128xf32> to vector<16x128xf32>
    %65 = arith.addf %63, %64 : vector<16x128xf32>
    %cst_48 = arith.constant 0.000000e+00 : f32
    %66 = vector.broadcast %cst_48 : f32 to vector<16x128xf32>
    %67 = arith.maximumf %65, %66 : vector<16x128xf32>
    %68 = arith.truncf %67 : vector<16x128xf32> to vector<16x128xbf16>
    %c6 = arith.constant 6 : index
    %c0_49 = arith.constant 0 : index
    %c0_50 = arith.constant 0 : index
    %69 = vector.load %arg4[%c6, %c0_49, %c0_50] : memref<7x128x128xbf16, #tpu.memory_space<vmem>>, vector<1x128x128xbf16>
    %70 = vector.shape_cast %69 : vector<1x128x128xbf16> to vector<128x128xbf16>
    %c6_51 = arith.constant 6 : index
    %c0_52 = arith.constant 0 : index
    %c0_53 = arith.constant 0 : index
    %71 = vector.load %arg5[%c6_51, %c0_52, %c0_53] : memref<7x1x128xf32, #tpu.memory_space<vmem>>, vector<1x1x128xf32>
    %72 = vector.shape_cast %71 : vector<1x1x128xf32> to vector<1x128xf32>
    %cst_54 = arith.constant dense<0.000000e+00> : vector<16x128xf32>
    %73 = tpu.matmul %68, %70, %cst_54 {dimension_numbers = #tpu.dot_dimension_numbers<[1], [0], [0], [1], [0, 0, 1, 1], [], []>} : vector<16x128xbf16>, vector<128x128xbf16>, vector<16x128xf32> -> vector<16x128xf32>
    %74 = vector.broadcast %72 : vector<1x128xf32> to vector<16x128xf32>
    %75 = arith.addf %73, %74 : vector<16x128xf32>
    %cst_55 = arith.constant 0.000000e+00 : f32
    %76 = vector.broadcast %cst_55 : f32 to vector<16x128xf32>
    %77 = arith.maximumf %75, %76 : vector<16x128xf32>
    %78 = arith.truncf %77 : vector<16x128xf32> to vector<16x128xbf16>
    %c0_56 = arith.constant 0 : index
    %c0_57 = arith.constant 0 : index
    %79 = vector.load %arg6[%c0_56, %c0_57] : memref<128x128xbf16, #tpu.memory_space<vmem>>, vector<128x128xbf16>
    %cst_58 = arith.constant dense<0.000000e+00> : vector<16x128xf32>
    %80 = tpu.matmul %78, %79, %cst_58 {dimension_numbers = #tpu.dot_dimension_numbers<[1], [0], [0], [1], [0, 0, 1, 1], [], []>} : vector<16x128xbf16>, vector<128x128xbf16>, vector<16x128xf32> -> vector<16x128xf32>
    %c0_59 = arith.constant 0 : index
    %c0_60 = arith.constant 0 : index
    %81 = vector.load %arg7[%c0_59, %c0_60] : memref<1x128xf32, #tpu.memory_space<vmem>>, vector<1x128xf32>
    %82 = vector.broadcast %81 : vector<1x128xf32> to vector<16x128xf32>
    %83 = arith.addf %80, %82 : vector<16x128xf32>
    %cst_61 = arith.constant dense<0xFF800000> : vector<16xf32>
    %84 = vector.multi_reduction <maximumf>, %83, %cst_61 [1] : vector<16x128xf32> to vector<16xf32>
    %85 = vector.shape_cast %84 : vector<16xf32> to vector<16x1xf32>
    %86 = vector.broadcast %85 : vector<16x1xf32> to vector<16x128xf32>
    %87 = arith.subf %83, %86 : vector<16x128xf32>
    %88 = math.exp %87 : vector<16x128xf32>
    %cst_62 = arith.constant dense<0.000000e+00> : vector<16xf32>
    %89 = vector.multi_reduction <add>, %88, %cst_62 [1] : vector<16x128xf32> to vector<16xf32>
    %90 = vector.shape_cast %89 : vector<16xf32> to vector<16x1xf32>
    %91 = vector.broadcast %90 : vector<16x1xf32> to vector<16x128xf32>
    %92 = arith.divf %88, %91 : vector<16x128xf32>
    %c0_63 = arith.constant 0 : index
    %c0_64 = arith.constant 0 : index
    %93 = vector.load %arg8[%c0_63, %c0_64] : memref<16x128xf32, #tpu.memory_space<vmem>>, vector<16x128xf32>
    tpu.vector_store %arg8[%c0_63, %c0_64], %92 {strides = array<i32>} : memref<16x128xf32, #tpu.memory_space<vmem>>, vector<16x128xf32>,
    return
  }
  func.func @transform_0(%arg0: i32) -> (i32, i32) {
    %c0_i32 = arith.constant 0 : i32
    %c0_i32_0 = arith.constant 0 : i32
    return %arg0, %c0_i32 : i32, i32
  }
  func.func @transform_1(%arg0: i32) -> (i32, i32) {
    %c0_i32 = arith.constant 0 : i32
    %c0_i32_0 = arith.constant 0 : i32
    %c0_i32_1 = arith.constant 0 : i32
    return %c0_i32, %c0_i32_0 : i32, i32
  }
  func.func @transform_2(%arg0: i32) -> (i32, i32) {
    %c0_i32 = arith.constant 0 : i32
    %c0_i32_0 = arith.constant 0 : i32
    %c0_i32_1 = arith.constant 0 : i32
    return %c0_i32, %c0_i32_0 : i32, i32
  }
  func.func @transform_3(%arg0: i32) -> (i32, i32, i32) {
    %c0_i32 = arith.constant 0 : i32
    %c0_i32_0 = arith.constant 0 : i32
    %c0_i32_1 = arith.constant 0 : i32
    %c0_i32_2 = arith.constant 0 : i32
    return %c0_i32, %c0_i32_0, %c0_i32_1 : i32, i32, i32
  }
  func.func @transform_4(%arg0: i32) -> (i32, i32, i32) {
    %c0_i32 = arith.constant 0 : i32
    %c0_i32_0 = arith.constant 0 : i32
    %c0_i32_1 = arith.constant 0 : i32
    %c0_i32_2 = arith.constant 0 : i32
    return %c0_i32, %c0_i32_0, %c0_i32_1 : i32, i32, i32
  }
  func.func @transform_5(%arg0: i32) -> (i32, i32) {
    %c0_i32 = arith.constant 0 : i32
    %c0_i32_0 = arith.constant 0 : i32
    %c0_i32_1 = arith.constant 0 : i32
    return %c0_i32, %c0_i32_0 : i32, i32
  }
  func.func @transform_6(%arg0: i32) -> (i32, i32) {
    %c0_i32 = arith.constant 0 : i32
    %c0_i32_0 = arith.constant 0 : i32
    %c0_i32_1 = arith.constant 0 : i32
    return %c0_i32, %c0_i32_0 : i32, i32
  }
  func.func @transform_7(%arg0: i32) -> (i32, i32) {
    %c0_i32 = arith.constant 0 : i32
    %c0_i32_0 = arith.constant 0 : i32
    return %arg0, %c0_i32 : i32, i32
  }
}

</mosaic_0001>

<bundles_post_ra>
// kernel: tpu_custom_call.1
= control target key start
LH: loop header
LB: loop body
LE: loop exit
PB: predicated region body
PF: predicated region fallthrough
CT: control target
= control target key end

     0   :  { %s2641_s0 = inlined_call_operand.hbm [shape: bf16[32,64], index: 0, kind: input, shape index: {}]   ;;  %s2642_s1 = inlined_call_operand.hbm [shape: bf16[64,128], index: 1, kind: input, shape index: {}]   ;;  %s2643_s2 = inlined_call_operand.hbm [shape: f32[1,128], index: 2, kind: input, shape index: {}]   ;;  %s2644_s3 = inlined_call_operand.hbm [shape: bf16[7,128,128], index: 3, kind: input, shape index: {}]   ;;  %s2645_s4 = inlined_call_operand.vmem [shape: f32[7,1,128], index: 4, kind: input, shape index: {}]   ;;  %s2646_s5 = inlined_call_operand.hbm [shape: bf16[128,128], index: 5, kind: input, shape index: {}]   ;;  %s2647_s6 = inlined_call_operand.vmem [shape: f32[1,128], index: 6, kind: input, shape index: {}]   ;;  %s2648_s7 = inlined_call_operand.hbm [shape: f32[32,128], index: 7, kind: output, shape index: {}]  }
   0x1   :  { %2655 = sst [smem:[#allocation16_spill]] %s2642_s1 }
   0x2   :  { %12 = vsyncpa [#allocation3], 0 }
   0x3   :  { %14 = vsyncpa [#allocation3 + $0x1], 0 }
   0x4   :  { %15 = vsyncpa [#allocation6], 0 }
   0x5   :  { %16 = vsyncpa [#allocation9], 0 }
   0x6   :  { %17 = vsyncpa [#allocation4], 0 }
   0x7   :  { %19 = vsyncpa [#allocation4 + $0x1], 0  ;;  %s2310_s24 = smov 0   ;;  %s2312_s25 = smov 0  }
   0x8   :  { %s2314_s26 = smov 0   ;;  %s2316_s27 = smov 0  }
   0x9 LB: > { %s2331_s28 = sadd.s32 4294967295, %s2256_s27   ;;  %s1524_s29 = sadd.s32 4294967294, %s2256_s27   ;;  %s2256_s27 = sphi %s2316_s27, %s2678_s27   ;;  %s2252_s26 = sphi %s2314_s26, %s2677_s26   ;;  %s2248_s25 = sphi %s2312_s25, %s2676_s25   ;;  %s2244_s24 = sphi %s2310_s24, %s2675_s24  }
   0xa   : > { %p45_p0 = scmp.ne.s32.totalorder %s2248_s25, %s2244_s24  ;;  %p2649_p1 = scmp.eq.s32.totalorder %s2331_s28, 0 }
   0xb   : > { %p201_p3 = scmp.eq.s32.totalorder %s1524_s29, 1  ;;  %p1525_p5 = scmp.ge.s32.totalorder %s2256_s27, 1 }
   0xc   : > { %p2340_p4 = por %p2649_p1, %p45_p0  ;;  %p208_p7 = scmp.lt.s32.totalorder %s2256_s27, 3 }
   0xd   : > { %p2345_p6 = por %p201_p3, %p45_p0  ;;  %s2258_s10 = smov [#allocation5]  }
   0xe   : > { %s2656_s30 = scalar_select %p2340_p4, 1, 0 }
   0xf   : > { %s2657_s8 = scalar_select %p2345_p6, 1, 0 }
  0x10   : > { %p2350_p8 = pnand %p1525_p5, %p208_p7  ;;  %s220_s11 = sshll.u32 %s2258_s10, 4  ;;  %s221_s11 = int_to_ptr.vmem [resolvable:$true] %s220_s11 }
  0x11   : > { %s2259_s13 = smov [#allocation8]   ;;  %s2260_s15 = smov [#allocation7]  }
  0x12   : > { %s2658_s9 = scalar_select %p2350_p8, 1, 0 }
  0x13   : > { %p1902_p9 = pneg %p2350_p8  ;;  %s244_s14 = sshll.u32 %s2259_s13, 4  ;;  %s245_s14 = int_to_ptr.vmem [resolvable:$true] %s244_s14 }
  0x14   : > { %s234_s16 = sshll.u32 %s2260_s15, 4  ;;  %s2063_s17 = scalar_lea.vmem %s221_s11, 512  ;;  %s235_s16 = int_to_ptr.vmem [resolvable:$true] %s234_s16 }
  0x15   : > { %p2359_p11 = pnand %p1902_p9, %p2649_p1  ;;  %p2064_p13 = scmp.ne.s32.totalorder %s221_s11, %s2063_s17 }
  0x16   : > { %p2071_p5 = scmp.lt.s32.totalorder %s221_s11, %s221_s11  ;;  %p2072_p7 = scmp.lt.s32.totalorder %s2063_s17, %s2063_s17 }
  0x17   : > { %p2054_p12 = pneg %p2359_p11 }
  0x18   : > { %p2073_p9 = por %p2072_p7, %p2071_p5 }
  0x19   : > { %p2066_p0 = pnand %p2064_p13, %p2054_p12 }
  0x1b   : > { %p2067_p3 = pneg %p2066_p0 }
  0x1d   : > { %p2074_p10 = pnand %p2073_p9, %p2067_p3 }
  0x1f   : > { %2077 = shalt.err (!%p2074_p10)
}
  0x20   : > { %s2650_s18 = smov 64   ;;  %s2651_s19 = smov 4  }
  0x21   : > { %s2660_s1 = sld [smem:[#allocation16_spill]]  ;;  %s2089_s22 = scalar_lea.vmem %s245_s14, 7168 }
  0x22   : > { %p2090_p13 = scmp.ne.s32.totalorder %s245_s14, %s2089_s22  ;;  %p2097_p3 = scmp.lt.s32.totalorder %s245_s14, %s245_s14 }
  0x23   : > { %p2098_p10 = scmp.lt.s32.totalorder %s2089_s22, %s2089_s22 }
  0x24   : > { %p2092_p0 = pnand %p2090_p13, %p2054_p12 }
  0x25   : > { %p2099_p7 = por %p2098_p10, %p2097_p3 }
  0x26   : > { %p2093_p5 = pneg %p2092_p0 }
  0x27   : > { %1905 = dma.hbm_to_vmem [thread:$0]  (!%p2359_p11), %s2660_s1, 512, %s221_s11, [#allocation6], %s2650_s18, %s2650_s18, %s2651_s19  }
  0x28   : > { %p2100_p9 = pnand %p2099_p7, %p2093_p5 }
  0x2a   : > { %2103 = shalt.err (!%p2100_p9)
}
  0x2b   : > { %1911 = dma.hbm_to_vmem [thread:$0]  (!%p2359_p11), %s2644_s3, 7168, %s245_s14, [#allocation9], %s2650_s18, %s2650_s18, %s2651_s19  }
  0x2c   : > { %s2115_s10 = scalar_lea.vmem %s235_s16, 16  ;;  %s2122_s11 = scalar_lea.vmem %s235_s16, 32 }
  0x2d   : > { %p2116_p1 = scmp.ne.s32.totalorder %s235_s16, %s2115_s10  ;;  %p2123_p5 = scmp.lt.s32.totalorder %s235_s16, %s235_s16 }
  0x2e   : > { %p2124_p3 = scmp.lt.s32.totalorder %s2122_s11, %s2115_s10 }
  0x2f   : > { %p2118_p13 = pnand %p2116_p1, %p2054_p12 }
  0x30   : > { %p2125_p10 = por %p2124_p3, %p2123_p5 }
  0x31   : > { %p2119_p0 = pneg %p2118_p13 }
  0x33   : > { %p2126_p7 = pnand %p2125_p10, %p2119_p0 }
  0x35   : > { %2129 = shalt.err (!%p2126_p7)
}
  0x36   : > { %1908 = dma.hbm_to_vmem [thread:$0]  (!%p2359_p11), %s2643_s2, 16, %s235_s16, [#allocation6]  }
  0x37   : > { %s2263_s14 = smov [#allocation10]  }
  0x38   : > { %s260_s17 = sshll.u32 %s2263_s14, 4  ;;  %s261_s17 = int_to_ptr.vmem [resolvable:$true] %s260_s17 }
  0x39   : > { %s2141_s20 = scalar_lea.vmem %s261_s17, 1024  ;;  %p2149_p2 = scmp.lt.s32.totalorder %s261_s17, %s261_s17 }
  0x3a   : > { %p2142_p9 = scmp.ne.s32.totalorder %s261_s17, %s2141_s20  ;;  %p2150_p5 = scmp.lt.s32.totalorder %s2141_s20, %s2141_s20 }
  0x3c   : > { %p2144_p1 = pnand %p2142_p9, %p2054_p12  ;;  %p2151_p0 = por %p2150_p5, %p2149_p2 }
  0x3e   : > { %p2145_p13 = pneg %p2144_p1 }
  0x40   : > { %p2152_p3 = pnand %p2151_p0, %p2145_p13 }
  0x42   : > { %2155 = shalt.err (!%p2152_p3)
}
  0x43   : > { %1914 = dma.hbm_to_vmem [thread:$0]  (!%p2359_p11), %s2646_s5, 1024, %s261_s17, [#allocation9], %s2650_s18, %s2650_s18, %s2651_s19  }
  0x44   : > { %s2407_s22 = sadd.s32 1, %s2256_s27   ;;  %s32_s12 = sadd.s32 1, %s2252_s26 }
  0x45   : > { %s29_s23 = ssub.s32 %s2256_s27, %s2407_s22  ;;  %p39_p2 = scmp.ne.s32.totalorder %s2252_s26, %s2248_s25 }
  0x46   : > { %p30_p12 = scmp.eq.s32.totalorder %s29_s23, 0  ;;  %p40_p10 = scmp.eq.s32.totalorder %s2256_s27, 0 }
  0x47   : > { %p2661_p7 = scmp.eq.s32.totalorder %s2331_s28, 1  ;;  %p1927_p1 = scmp.lt.s32.totalorder %s2256_s27, 2 }
  0x48   : > { %s2423_s10 = scalar_select %p30_p12, %s2252_s26, %s32_s12  }
  0x49   : > { %p2417_p9 = por %p2661_p7, %p39_p2  ;;  %p41_p13 = por %p40_p10, %p39_p2 }
  0x4a   : > { %s277_s11 = sand.u32 1, %s2252_s26   ;;  %s1631_s15 = sshll.u32 %s2256_s27, 7 }
  0x4b   : > { %s2662_s29 = scalar_select %p2417_p9, 1, 0 }
  0x4c   : > { %s1531_s13 = sshll.u32 %s277_s11, 3  ;;  %s2430_s20 = scalar_lea.hbm %s2641_s0, %s1631_s15 }
  0x4d   : > { %s281_s16 = scalar_lea.vmem [#allocation2], %s1531_s13  ;;  %p2434_p11 = pnand %p1927_p1, %p41_p13 }
  0x4e   : > { %s288_s21 = sshll.u32 %s281_s16, 4  ;;  %s2438_s12 = scalar_lea.sflag [#allocation3], %s277_s11  ;;  %s2432_s21 = int_to_ptr.vmem [resolvable:$true] %s288_s21 }
  0x4f   : > { %s2156_s18 = scalar_lea.hbm %s2430_s20, 128  ;;  %p2158_p0 = pneg %p2434_p11 }
  0x50   : > { %p2157_p5 = scmp.ne.s32.totalorder %s2430_s20, %s2156_s18  ;;  %s2161_s13 = scalar_lea.hbm %s2641_s0, 256 }
  0x51   : > { %p2162_p12 = scmp.lt.s32.totalorder %s2430_s20, %s2641_s0  ;;  %p2163_p10 = scmp.lt.s32.totalorder %s2161_s13, %s2156_s18 }
  0x52   : > { %p2159_p3 = pnand %p2158_p0, %p2157_p5 }
  0x53   : > { %p2164_p7 = por %p2163_p10, %p2162_p12 }
  0x54   : > { %p2160_p2 = pneg %p2159_p3 }
  0x56   : > { %p2165_p1 = pnand %p2164_p7, %p2160_p2 }
  0x58   : > { %2168 = shalt.err (!%p2165_p1)
}
  0x59   : > { %s2169_s11 = scalar_lea.vmem %s2432_s21, 128  ;;  %s2264_s19 = smov [#allocation2]  }
  0x5a   : > { %p2170_p13 = scmp.ne.s32.totalorder %s2432_s21, %s2169_s11  ;;  %s2174_s1 = sshll.u32 %s2264_s19, 4  ;;  %s2175_s1 = int_to_ptr.vmem [resolvable:$false] %s2174_s1 }
  0x5b   : > { %s2176_s15 = scalar_lea.vmem %s2175_s1, 256  ;;  %p2177_p3 = scmp.lt.s32.totalorder %s2432_s21, %s2175_s1 }
  0x5c   : > { %p2172_p6 = pnand %p2170_p13, %p2158_p0  ;;  %p2178_p9 = scmp.lt.s32.totalorder %s2176_s15, %s2169_s11 }
  0x5e   : > { %p2173_p5 = pneg %p2172_p6  ;;  %p2179_p4 = por %p2178_p9, %p2177_p3 }
  0x60   : > { %p2180_p8 = pnand %p2179_p4, %p2173_p5 }
  0x62   : > { %2183 = shalt.err (!%p2180_p8)
}
  0x63   : > { %s2664_s18 = smov 4   ;;  %s2665_s14 = smov 64  }
  0x64   : > { %1918 = dma.hbm_to_vmem [thread:$0]  (!%p2434_p11), %s2430_s20, 128, %s2432_s21, %s2438_s12, %s2665_s14, %s2665_s14, %s2664_s18  }
  0x65   : > { %p2666_p6 = scmp.ne.s32.totalorder %s2658_s9, 0 }
  0x66   : > { %s2465_s19 = sand.u32 (!%p2666_p6), 1, %s2248_s25   ;;  %p2667_p4 = scmp.ne.s32.totalorder (!%p2666_p6), %s2656_s30, 0 }
  0x67   : > { %300 = sbr.rel (%p2666_p6) target bundleno = 2280 (0x8e8), region = 48  ;;  %s1535_s1 = sshll.u32 (!%p2666_p6), %s2465_s19, 3 }
  0x68   : > { %s303_s13 = scalar_lea.sflag (!%p2666_p6), [#allocation3], %s2465_s19  ;;  %s306_s17 = scalar_lea.vmem (!%p2666_p6), [#allocation2], %s1535_s1 }
  0x6c   : > { %2227 = dma.done.wait (%p2667_p4), %s303_s13, 128  }
  0x6d   : > { %2229 = vsyncadd (%p2667_p4), %s303_s13, 4294967168  ;;  %p2668_p8 = scmp.eq.s32.totalorder %s2331_s28, 0 }
  0x6f   : > { %2231 = dma.done.wait (%p2668_p8), [#allocation6], 528   ;;  %p2669_p9 = pmov %p2668_p8 }
  0x70   : > { %p2670_p11 = pmov %p2668_p8 }
  0x71   : > { %2233 = vsyncadd (%p2669_p9), [#allocation6], 4294966768 }
  0x72   : > { %2235 = dma.done.wait (%p2670_p11), [#allocation9], 8192   ;;  %p2671_p0 = pmov %p2668_p8 }
  0x73   : > { %v2265_v0 = vmov 0.0   ;;  %vm2266_vm0 = vmmov 0   ;;  %v1975_v1 = vld [vmem:[#allocation5 + $0x18] sm:$0xff]   ;;  %v1976_v2 = vld [vmem:[#allocation5 + $0x10] sm:$0xff]   ;;  %v1977_v4 = vld [vmem:[#allocation5 + $0x8] sm:$0xff]   ;;  %vm402_vm1 = vcmask 523264  }
  0x74   : > { %2237 = vsyncadd (%p2671_p0), [#allocation9], 4294959104  ;;  %1710 = vmatprep.subr.bf16.mxu0 %v2265_v0  ;;  %1718 = vmatprep.mubr.msk.bf16.mxu0 %vm2266_vm0, %v2265_v0  ;;  %v1980_v3 = vld [vmem:[#allocation8 + $0x38] sm:$0xff]   ;;  %v1981_v5 = vld [vmem:[#allocation8 + $0x30] sm:$0xff]   ;;  %s1540_s20 = sshll.u32 %s2465_s19, 4  ;;  %s1632_s21 = sshll.u32 %s2331_s28, 8 }
  0x75   : > { %1722 = vmatprep.subr.bf16.mxu1 %v2265_v0  ;;  %1738 = vmatprep.mubr.msk.bf16.mxu1 %vm2266_vm0, %v2265_v0  ;;  %v1978_v6 = vld [vmem:[#allocation5] sm:$0xff]   ;;  %v1982_v7 = vld [vmem:[#allocation8 + $0x28] sm:$0xff]   ;;  %v1985_v11 = vld [vmem:[#allocation8 + $0x10] sm:$0xff]   ;;  %s352_s23 = scalar_lea.vmem [#allocation11], %s1540_s20  ;;  %s2596_s15 = scalar_lea.hbm %s2648_s7, %s1632_s21 }
  0x76   : > { %1711 = vmatpush3.bf16.msra.mxu0 %v1975_v1  ;;  %1723 = vmatpush3.bf16.msra.mxu1 %v1980_v3  ;;  %v1979_v8 = vld [vmem:[%s306_s17] sm:$0xff]   ;;  %v1983_v9 = vld [vmem:[#allocation8 + $0x20] sm:$0xff]   ;;  %v1541_v19 = vld [vmem:[#allocation7] ss:$0 sm:$0xff]  ;;  %s1413_s12 = sshll.u32 %s352_s23, 4  ;;  %s1400_s18 = scalar_lea.sflag [#allocation4], %s2465_s19  ;;  %s2598_s12 = int_to_ptr.vmem [resolvable:$true] %s1413_s12 }
  0x77   : > { %1712 = vmatprep.subr.bf16.mxu0 %v2265_v0  ;;  %1724 = vmatprep.subr.bf16.mxu1 %v2265_v0  ;;  %v1984_v10 = vld [vmem:[#allocation8 + $0x18] sm:$0xff]   ;;  %v1986_v12 = vld [vmem:[#allocation8 + $0x8] sm:$0xff]   ;;  %v1987_v13 = vld [vmem:[#allocation8] sm:$0xff]   ;;  %s2184_s14 = scalar_lea.vmem %s2598_s12, 256  ;;  %p2672_p12 = scmp.ne.s32.totalorder %s2662_s29, 0 }
  0x78   : > { %v1988_v14 = vld [vmem:[#allocation8 + $0x78] sm:$0xff]   ;;  %v1989_v15 = vld [vmem:[#allocation8 + $0x70] sm:$0xff]   ;;  %v1990_v16 = vld [vmem:[#allocation8 + $0x68] sm:$0xff]   ;;  %p2185_p2 = scmp.ne.s32.totalorder %s2598_s12, %s2184_s14  ;;  %s2267_s28 = smov [#allocation11]  }
  0x79   : > { %v1991_v17 = vld [vmem:[#allocation8 + $0x60] sm:$0xff]   ;;  %v1992_v18 = vld [vmem:[#allocation8 + $0x58] sm:$0xff]   ;;  %v1993_v29 = vld [vmem:[#allocation8 + $0x50] sm:$0xff]   ;;  %s2188_s1 = sshll.u32 %s2267_s28, 4  ;;  %s2189_s1 = int_to_ptr.vmem [resolvable:$false] %s2188_s1 }
  0x7a   : > { %1713 = vmatpush3.bf16.msra.mxu0 %v1976_v2  ;;  %1725 = vmatpush3.bf16.msra.mxu1 %v1981_v5  ;;  %v1994_v30 = vld [vmem:[#allocation8 + $0x48] sm:$0xff]   ;;  %v1995_v31 = vld [vmem:[#allocation8 + $0x40] sm:$0xff]   ;;  %v1996_v32 = vld [vmem:[#allocation8 + $0xb8] sm:$0xff]   ;;  %p2186_p10 = pnand %p2185_p2, %p2672_p12  ;;  %s2190_s13 = scalar_lea.vmem %s2189_s1, 512 }
  0x7b   : > { %1714 = vmatprep.subr.bf16.mxu0 %v2265_v0  ;;  %1726 = vmatprep.subr.bf16.mxu1 %v2265_v0  ;;  %v1997_v33 = vld [vmem:[#allocation8 + $0xb0] sm:$0xff]   ;;  %v1998_v34 = vld [vmem:[#allocation8 + $0xa8] sm:$0xff]   ;;  %v1999_v35 = vld [vmem:[#allocation8 + $0xa0] sm:$0xff]   ;;  %p2191_p1 = scmp.lt.s32.totalorder %s2598_s12, %s2189_s1  ;;  %p2192_p13 = scmp.lt.s32.totalorder %s2190_s13, %s2184_s14 }
  0x7c   : > { %v2000_v36 = vld [vmem:[#allocation8 + $0x98] sm:$0xff]   ;;  %v1548_v37 = vld [vmem:[%s2645_s4] ss:$0 sm:$0xff]  ;;  %v2001_v47 = vld [vmem:[#allocation8 + $0x90] sm:$0xff]   ;;  %p2187_p7 = pneg %p2186_p10 }
  0x7d   : > { %v2002_v48 = vld [vmem:[#allocation8 + $0x88] sm:$0xff]   ;;  %v2003_v49 = vld [vmem:[#allocation8 + $0x80] sm:$0xff]   ;;  %v2004_v50 = vld [vmem:[#allocation8 + $0xf8] sm:$0xff]   ;;  %p2193_p5 = por %p2192_p13, %p2191_p1 }
  0x7e   : > { %1715 = vmatpush3.bf16.msra.mxu0 %v1977_v4  ;;  %1727 = vmatpush3.bf16.msra.mxu1 %v1982_v7  ;;  %v2005_v51 = vld [vmem:[#allocation8 + $0xf0] sm:$0xff]   ;;  %v2006_v52 = vld [vmem:[#allocation8 + $0xe8] sm:$0xff]   ;;  %v2007_v53 = vld [vmem:[#allocation8 + $0xe0] sm:$0xff]  }
  0x7f   : > { %1716 = vmatprep.subr.bf16.mxu0 %v2265_v0  ;;  %1728 = vmatprep.subr.bf16.mxu1 %v2265_v0  ;;  %v2008_v54 = vld [vmem:[#allocation8 + $0xd8] sm:$0xff]   ;;  %v1558_v55 = vld [vmem:[%s2645_s4 + $0x1] ss:$0 sm:$0xff]  ;;  %v2009_v2 = vld [vmem:[#allocation8 + $0xd0] sm:$0xff]   ;;  %p2194_p3 = pnand %p2193_p5, %p2187_p7 }
  0x80   : > { %v2010_v3 = vld [vmem:[#allocation8 + $0xc8] sm:$0xff]   ;;  %v2011_v4 = vld [vmem:[#allocation8 + $0xc0] sm:$0xff]   ;;  %v2012_v5 = vld [vmem:[#allocation8 + $0x138] sm:$0xff]  }
  0x81   : > { %v2014_v7 = vld [vmem:[#allocation8 + $0x128] sm:$0xff]  }
  0x82   : > { %1717 = vmatpush3.bf16.msra.mxu0 %v1978_v6  ;;  %1729 = vmatpush3.bf16.msra.mxu1 %v1983_v9  ;;  %v2013_v6 = vld [vmem:[#allocation8 + $0x130] sm:$0xff]   ;;  %v2016_v9 = vld [vmem:[#allocation8 + $0x118] sm:$0xff]  }
  0x83   : > { %1742 = vmatprep.subr.bf16.mxu0 %v2265_v0  ;;  %1730 = vmatprep.subr.bf16.mxu1 %v2265_v0 }
  0x85   : > { %1719 = vmatmul.mubr.msk.bf16.vlgmr.msra.gmra.mxu0 %vm402_vm1, %v1979_v8  ;;  %v2015_v8 = vld [vmem:[#allocation8 + $0x120] sm:$0xff]  }
  0x86   : > { %1758 = vmatprep.mubr.msk.bf16.mxu0 %vm2266_vm0, %v2265_v0  ;;  %1731 = vmatpush3.bf16.msra.mxu1 %v1984_v10  ;;  %v1568_v10 = vld [vmem:[%s2645_s4 + $0x2] ss:$0 sm:$0xff] }
  0x87   : > { %1732 = vmatprep.subr.bf16.mxu1 %v2265_v0  ;;  %1743 = vmatpush3.bf16.msra.mxu0 %v1988_v14 }
  0x88   : > { %1744 = vmatprep.subr.bf16.mxu0 %v2265_v0 }
  0x8a   : > { %1733 = vmatpush3.bf16.msra.mxu1 %v1985_v11 }
  0x8b   : > { %1734 = vmatprep.subr.bf16.mxu1 %v2265_v0  ;;  %1745 = vmatpush3.bf16.msra.mxu0 %v1989_v15 }
  0x8c   : > { %1746 = vmatprep.subr.bf16.mxu0 %v2265_v0 }
  0x8e   : > { %1735 = vmatpush3.bf16.msra.mxu1 %v1986_v12 }
  0x8f   : > { %1736 = vmatprep.subr.bf16.mxu1 %v2265_v0  ;;  %1747 = vmatpush3.bf16.msra.mxu0 %v1990_v16 }
  0x90   : > { %1748 = vmatprep.subr.bf16.mxu0 %v2265_v0 }
  0x92   : > { %1737 = vmatpush3.bf16.msra.mxu1 %v1987_v13 }
  0x93   : > { %1762 = vmatprep.subr.bf16.mxu1 %v2265_v0  ;;  %1749 = vmatpush3.bf16.msra.mxu0 %v1991_v17 }
  0x94   : > { %1750 = vmatprep.subr.bf16.mxu0 %v2265_v0 }
  0x97   : > { %1751 = vmatpush3.bf16.msra.mxu0 %v1992_v18 }
  0x98   : > { %1752 = vmatprep.subr.bf16.mxu0 %v2265_v0 }
  0x9b   : > { %1753 = vmatpush3.bf16.msra.mxu0 %v1993_v29 }
  0x9c   : > { %1754 = vmatprep.subr.bf16.mxu0 %v2265_v0 }
  0x9f   : > { %1755 = vmatpush3.bf16.msra.mxu0 %v1994_v30 }
  0xa0   : > { %1756 = vmatprep.subr.bf16.mxu0 %v2265_v0 }
  0xa3   : > { %1757 = vmatpush3.bf16.msra.mxu0 %v1995_v31 }
  0xa4   : > { %1782 = vmatprep.subr.bf16.mxu0 %v2265_v0 }
 0x145   : > { %v440_v20 = vpop.f32.mrf.mxu0 }
 0x146   : > { %v441_v22 = vadd.f32 %v1541_v19, %v440_v20  ;;  %v2017_v20 = vld [vmem:[#allocation8 + $0x110] sm:$0xff]  }
 0x147   : > { %v1720_v21 = vpop.f32.mrf.mxu0 }
 0x148   : > { %v447_v26 = vmax.f32 %v441_v22, 0.0  ;;  %v2018_v21 = vld [vmem:[#allocation8 + $0x108] sm:$0xff]   ;;  %v2019_v22 = vld [vmem:[#allocation8 + $0x100] sm:$0xff]  }
 0x149   : > { %v443_v23 = vpop.f32.mrf.mxu0 }
 0x14a   : > { %v444_v24 = vadd.f32 %v1541_v19, %v443_v23  ;;  %v2020_v23 = vld [vmem:[#allocation8 + $0x178] sm:$0xff]  }
 0x14b   : > { %v1721_v25 = vpop.f32.mrf.mxu0 }
 0x14c   : > { %v448_v27 = vmax.f32 %v444_v24, 0.0  ;;  %v2021_v24 = vld [vmem:[#allocation8 + $0x170] sm:$0xff]   ;;  %v2022_v25 = vld [vmem:[#allocation8 + $0x168] sm:$0xff]  }
 0x14e   : > { %v449_v28 = vpack.c.bf16 %v448_v27, %v447_v26  ;;  %v2023_v26 = vld [vmem:[#allocation8 + $0x160] sm:$0xff]   ;;  %v2024_v27 = vld [vmem:[#allocation8 + $0x158] sm:$0xff]  }
 0x150   : > { %1739 = vmatmul.mubr.bf16.vlgmr.msra.gmra.mxu1 %v449_v28  ;;  %v1578_v28 = vld [vmem:[%s2645_s4 + $0x3] ss:$0 sm:$0xff] }
 0x151   : > { %1778 = vmatprep.mubr.msk.bf16.mxu1 %vm2266_vm0, %v2265_v0  ;;  %1763 = vmatpush3.bf16.msra.mxu1 %v1996_v32 }
 0x152   : > { %1764 = vmatprep.subr.bf16.mxu1 %v2265_v0 }
 0x155   : > { %1765 = vmatpush3.bf16.msra.mxu1 %v1997_v33 }
 0x156   : > { %1766 = vmatprep.subr.bf16.mxu1 %v2265_v0 }
 0x159   : > { %1767 = vmatpush3.bf16.msra.mxu1 %v1998_v34 }
 0x15a   : > { %1768 = vmatprep.subr.bf16.mxu1 %v2265_v0 }
 0x15d   : > { %1769 = vmatpush3.bf16.msra.mxu1 %v1999_v35 }
 0x15e   : > { %1770 = vmatprep.subr.bf16.mxu1 %v2265_v0 }
 0x161   : > { %1771 = vmatpush3.bf16.msra.mxu1 %v2000_v36 }
 0x162   : > { %1772 = vmatprep.subr.bf16.mxu1 %v2265_v0 }
 0x165   : > { %1773 = vmatpush3.bf16.msra.mxu1 %v2001_v47 }
 0x166   : > { %1774 = vmatprep.subr.bf16.mxu1 %v2265_v0 }
 0x169   : > { %1775 = vmatpush3.bf16.msra.mxu1 %v2002_v48 }
 0x16a   : > { %1776 = vmatprep.subr.bf16.mxu1 %v2265_v0 }
 0x16d   : > { %1777 = vmatpush3.bf16.msra.mxu1 %v2003_v49 }
 0x16e   : > { %1802 = vmatprep.subr.bf16.mxu1 %v2265_v0 }
 0x210   : > { %v555_v38 = vpop.f32.mrf.mxu1 }
 0x211   : > { %v556_v40 = vadd.f32 %v1548_v37, %v555_v38  ;;  %v2025_v38 = vld [vmem:[#allocation8 + $0x150] sm:$0xff]  }
 0x212   : > { %v1740_v39 = vpop.f32.mrf.mxu1 }
 0x213   : > { %v562_v44 = vmax.f32 %v556_v40, 0.0  ;;  %v2026_v39 = vld [vmem:[#allocation8 + $0x148] sm:$0xff]   ;;  %v2027_v40 = vld [vmem:[#allocation8 + $0x140] sm:$0xff]  }
 0x214   : > { %v558_v41 = vpop.f32.mrf.mxu1 }
 0x215   : > { %v559_v42 = vadd.f32 %v1548_v37, %v558_v41  ;;  %v2028_v41 = vld [vmem:[#allocation8 + $0x1b8] sm:$0xff]  }
 0x216   : > { %v1741_v43 = vpop.f32.mrf.mxu1 }
 0x217   : > { %v563_v45 = vmax.f32 %v559_v42, 0.0  ;;  %v2029_v42 = vld [vmem:[#allocation8 + $0x1b0] sm:$0xff]   ;;  %v2030_v43 = vld [vmem:[#allocation8 + $0x1a8] sm:$0xff]  }
 0x219   : > { %v564_v46 = vpack.c.bf16 %v563_v45, %v562_v44  ;;  %v2031_v44 = vld [vmem:[#allocation8 + $0x1a0] sm:$0xff]   ;;  %v2032_v45 = vld [vmem:[#allocation8 + $0x198] sm:$0xff]  }
 0x21b   : > { %1759 = vmatmul.mubr.bf16.vlgmr.msra.gmra.mxu0 %v564_v46  ;;  %v1588_v46 = vld [vmem:[%s2645_s4 + $0x4] ss:$0 sm:$0xff] }
 0x21c   : > { %1798 = vmatprep.mubr.msk.bf16.mxu0 %vm2266_vm0, %v2265_v0  ;;  %1783 = vmatpush3.bf16.msra.mxu0 %v2004_v50 }
 0x21d   : > { %1784 = vmatprep.subr.bf16.mxu0 %v2265_v0 }
 0x220   : > { %1785 = vmatpush3.bf16.msra.mxu0 %v2005_v51 }
 0x221   : > { %1786 = vmatprep.subr.bf16.mxu0 %v2265_v0 }
 0x224   : > { %1787 = vmatpush3.bf16.msra.mxu0 %v2006_v52 }
 0x225   : > { %1788 = vmatprep.subr.bf16.mxu0 %v2265_v0 }
 0x228   : > { %1789 = vmatpush3.bf16.msra.mxu0 %v2007_v53 }
 0x229   : > { %1790 = vmatprep.subr.bf16.mxu0 %v2265_v0 }
 0x22c   : > { %1791 = vmatpush3.bf16.msra.mxu0 %v2008_v54 }
 0x22d   : > { %1792 = vmatprep.subr.bf16.mxu0 %v2265_v0 }
 0x230   : > { %1793 = vmatpush3.bf16.msra.mxu0 %v2009_v2 }
 0x231   : > { %1794 = vmatprep.subr.bf16.mxu0 %v2265_v0 }
 0x234   : > { %1795 = vmatpush3.bf16.msra.mxu0 %v2010_v3 }
 0x235   : > { %1796 = vmatprep.subr.bf16.mxu0 %v2265_v0 }
 0x238   : > { %1797 = vmatpush3.bf16.msra.mxu0 %v2011_v4 }
 0x239   : > { %1822 = vmatprep.subr.bf16.mxu0 %v2265_v0 }
 0x2db   : > { %v672_v56 = vpop.f32.mrf.mxu0 }
 0x2dc   : > { %v673_v58 = vadd.f32 %v1558_v55, %v672_v56  ;;  %v2033_v56 = vld [vmem:[#allocation8 + $0x190] sm:$0xff]  }
 0x2dd   : > { %v1760_v57 = vpop.f32.mrf.mxu0 }
 0x2de   : > { %v679_v62 = vmax.f32 %v673_v58, 0.0  ;;  %v2034_v57 = vld [vmem:[#allocation8 + $0x188] sm:$0xff]   ;;  %v2035_v58 = vld [vmem:[#allocation8 + $0x180] sm:$0xff]  }
 0x2df   : > { %v675_v59 = vpop.f32.mrf.mxu0 }
 0x2e0   : > { %v676_v60 = vadd.f32 %v1558_v55, %v675_v59  ;;  %v2036_v59 = vld [vmem:[#allocation10 + $0x38] sm:$0xff]  }
 0x2e1   : > { %v1761_v61 = vpop.f32.mrf.mxu0 }
 0x2e2   : > { %v680_v63 = vmax.f32 %v676_v60, 0.0  ;;  %v2037_v60 = vld [vmem:[#allocation10 + $0x30] sm:$0xff]   ;;  %v2038_v61 = vld [vmem:[#allocation10 + $0x28] sm:$0xff]  }
 0x2e4   : > { %v681_v1 = vpack.c.bf16 %v680_v63, %v679_v62  ;;  %v2039_v62 = vld [vmem:[#allocation10 + $0x20] sm:$0xff]   ;;  %v2040_v63 = vld [vmem:[#allocation10 + $0x18] sm:$0xff]  }
 0x2e6   : > { %1779 = vmatmul.mubr.bf16.vlgmr.msra.gmra.mxu1 %v681_v1  ;;  %v1598_v1 = vld [vmem:[%s2645_s4 + $0x5] ss:$0 sm:$0xff] }
 0x2e7   : > { %1818 = vmatprep.mubr.msk.bf16.mxu1 %vm2266_vm0, %v2265_v0  ;;  %1803 = vmatpush3.bf16.msra.mxu1 %v2012_v5 }
 0x2e8   : > { %1804 = vmatprep.subr.bf16.mxu1 %v2265_v0 }
 0x2eb   : > { %1805 = vmatpush3.bf16.msra.mxu1 %v2013_v6 }
 0x2ec   : > { %1806 = vmatprep.subr.bf16.mxu1 %v2265_v0 }
 0x2ef   : > { %1807 = vmatpush3.bf16.msra.mxu1 %v2014_v7 }
 0x2f0   : > { %1808 = vmatprep.subr.bf16.mxu1 %v2265_v0 }
 0x2f3   : > { %1809 = vmatpush3.bf16.msra.mxu1 %v2015_v8 }
 0x2f4   : > { %1810 = vmatprep.subr.bf16.mxu1 %v2265_v0 }
 0x2f7   : > { %1811 = vmatpush3.bf16.msra.mxu1 %v2016_v9 }
 0x2f8   : > { %1812 = vmatprep.subr.bf16.mxu1 %v2265_v0 }
 0x2fb   : > { %1813 = vmatpush3.bf16.msra.mxu1 %v2017_v20 }
 0x2fc   : > { %1814 = vmatprep.subr.bf16.mxu1 %v2265_v0 }
 0x2ff   : > { %1815 = vmatpush3.bf16.msra.mxu1 %v2018_v21 }
 0x300   : > { %1816 = vmatprep.subr.bf16.mxu1 %v2265_v0 }
 0x303   : > { %1817 = vmatpush3.bf16.msra.mxu1 %v2019_v22 }
 0x304   : > { %1842 = vmatprep.subr.bf16.mxu1 %v2265_v0 }
 0x3a6   : > { %v789_v11 = vpop.f32.mrf.mxu1 }
 0x3a7   : > { %v790_v13 = vadd.f32 %v1568_v10, %v789_v11  ;;  %v2041_v11 = vld [vmem:[#allocation10 + $0x10] sm:$0xff]  }
 0x3a8   : > { %v1780_v12 = vpop.f32.mrf.mxu1 }
 0x3a9   : > { %v796_v17 = vmax.f32 %v790_v13, 0.0  ;;  %v2042_v12 = vld [vmem:[#allocation10 + $0x8] sm:$0xff]   ;;  %v2043_v13 = vld [vmem:[#allocation10] sm:$0xff]  }
 0x3aa   : > { %v792_v14 = vpop.f32.mrf.mxu1 }
 0x3ab   : > { %v793_v15 = vadd.f32 %v1568_v10, %v792_v14  ;;  %v1608_v14 = vld [vmem:[%s2645_s4 + $0x6] ss:$0 sm:$0xff] }
 0x3ac   : > { %v1781_v16 = vpop.f32.mrf.mxu1 }
 0x3ad   : > { %v797_v18 = vmax.f32 %v793_v15, 0.0 }
 0x3af   : > { %v798_v19 = vpack.c.bf16 %v797_v18, %v796_v17 }
 0x3b1   : > { %1799 = vmatmul.mubr.bf16.vlgmr.msra.gmra.mxu0 %v798_v19 }
 0x3b2   : > { %1838 = vmatprep.mubr.msk.bf16.mxu0 %vm2266_vm0, %v2265_v0  ;;  %1823 = vmatpush3.bf16.msra.mxu0 %v2020_v23 }
 0x3b3   : > { %1824 = vmatprep.subr.bf16.mxu0 %v2265_v0 }
 0x3b6   : > { %1825 = vmatpush3.bf16.msra.mxu0 %v2021_v24 }
 0x3b7   : > { %1826 = vmatprep.subr.bf16.mxu0 %v2265_v0 }
 0x3ba   : > { %1827 = vmatpush3.bf16.msra.mxu0 %v2022_v25 }
 0x3bb   : > { %1828 = vmatprep.subr.bf16.mxu0 %v2265_v0 }
 0x3be   : > { %1829 = vmatpush3.bf16.msra.mxu0 %v2023_v26 }
 0x3bf   : > { %1830 = vmatprep.subr.bf16.mxu0 %v2265_v0 }
 0x3c2   : > { %1831 = vmatpush3.bf16.msra.mxu0 %v2024_v27 }
 0x3c3   : > { %1832 = vmatprep.subr.bf16.mxu0 %v2265_v0 }
 0x3c6   : > { %1833 = vmatpush3.bf16.msra.mxu0 %v2025_v38 }
 0x3c7   : > { %1834 = vmatprep.subr.bf16.mxu0 %v2265_v0 }
 0x3ca   : > { %1835 = vmatpush3.bf16.msra.mxu0 %v2026_v39 }
 0x3cb   : > { %1836 = vmatprep.subr.bf16.mxu0 %v2265_v0 }
 0x3ce   : > { %1837 = vmatpush3.bf16.msra.mxu0 %v2027_v40 }
 0x3cf   : > { %1862 = vmatprep.subr.bf16.mxu0 %v2265_v0 }
 0x471   : > { %v906_v29 = vpop.f32.mrf.mxu0 }
 0x472   : > { %v907_v31 = vadd.f32 %v1578_v28, %v906_v29 }
 0x473   : > { %v1800_v30 = vpop.f32.mrf.mxu0 }
 0x474   : > { %v913_v35 = vmax.f32 %v907_v31, 0.0 }
 0x475   : > { %v909_v32 = vpop.f32.mrf.mxu0 }
 0x476   : > { %v910_v33 = vadd.f32 %v1578_v28, %v909_v32 }
 0x477   : > { %v1801_v34 = vpop.f32.mrf.mxu0 }
 0x478   : > { %v914_v36 = vmax.f32 %v910_v33, 0.0 }
 0x47a   : > { %v915_v37 = vpack.c.bf16 %v914_v36, %v913_v35 }
 0x47c   : > { %1819 = vmatmul.mubr.bf16.vlgmr.msra.gmra.mxu1 %v915_v37 }
 0x47d   : > { %1858 = vmatprep.mubr.msk.bf16.mxu1 %vm2266_vm0, %v2265_v0  ;;  %1843 = vmatpush3.bf16.msra.mxu1 %v2028_v41 }
 0x47e   : > { %1844 = vmatprep.subr.bf16.mxu1 %v2265_v0 }
 0x481   : > { %1845 = vmatpush3.bf16.msra.mxu1 %v2029_v42 }
 0x482   : > { %1846 = vmatprep.subr.bf16.mxu1 %v2265_v0 }
 0x485   : > { %1847 = vmatpush3.bf16.msra.mxu1 %v2030_v43 }
 0x486   : > { %1848 = vmatprep.subr.bf16.mxu1 %v2265_v0 }
 0x489   : > { %1849 = vmatpush3.bf16.msra.mxu1 %v2031_v44 }
 0x48a   : > { %1850 = vmatprep.subr.bf16.mxu1 %v2265_v0 }
 0x48d   : > { %1851 = vmatpush3.bf16.msra.mxu1 %v2032_v45 }
 0x48e   : > { %1852 = vmatprep.subr.bf16.mxu1 %v2265_v0 }
 0x491   : > { %1853 = vmatpush3.bf16.msra.mxu1 %v2033_v56 }
 0x492   : > { %1854 = vmatprep.subr.bf16.mxu1 %v2265_v0 }
 0x495   : > { %1855 = vmatpush3.bf16.msra.mxu1 %v2034_v57 }
 0x496   : > { %1856 = vmatprep.subr.bf16.mxu1 %v2265_v0 }
 0x499   : > { %1857 = vmatpush3.bf16.msra.mxu1 %v2035_v58 }
 0x53c   : > { %v1023_v47 = vpop.f32.mrf.mxu1 }
 0x53d   : > { %v1024_v49 = vadd.f32 %v1588_v46, %v1023_v47 }
 0x53e   : > { %v1820_v48 = vpop.f32.mrf.mxu1 }
 0x53f   : > { %v1030_v53 = vmax.f32 %v1024_v49, 0.0 }
 0x540   : > { %v1026_v50 = vpop.f32.mrf.mxu1 }
 0x541   : > { %v1027_v51 = vadd.f32 %v1588_v46, %v1026_v50 }
 0x542   : > { %v1821_v52 = vpop.f32.mrf.mxu1 }
 0x543   : > { %v1031_v54 = vmax.f32 %v1027_v51, 0.0 }
 0x545   : > { %v1032_v55 = vpack.c.bf16 %v1031_v54, %v1030_v53 }
 0x547   : > { %1839 = vmatmul.mubr.bf16.vlgmr.msra.gmra.mxu0 %v1032_v55 }
 0x548   : > { %1878 = vmatprep.mubr.msk.bf16.mxu0 %vm2266_vm0, %v2265_v0  ;;  %1863 = vmatpush3.bf16.msra.mxu0 %v2036_v59 }
 0x549   : > { %1864 = vmatprep.subr.bf16.mxu0 %v2265_v0 }
 0x54c   : > { %1865 = vmatpush3.bf16.msra.mxu0 %v2037_v60 }
 0x54d   : > { %1866 = vmatprep.subr.bf16.mxu0 %v2265_v0 }
 0x550   : > { %1867 = vmatpush3.bf16.msra.mxu0 %v2038_v61 }
 0x551   : > { %1868 = vmatprep.subr.bf16.mxu0 %v2265_v0 }
 0x554   : > { %1869 = vmatpush3.bf16.msra.mxu0 %v2039_v62 }
 0x555   : > { %1870 = vmatprep.subr.bf16.mxu0 %v2265_v0 }
 0x558   : > { %1871 = vmatpush3.bf16.msra.mxu0 %v2040_v63 }
 0x559   : > { %1872 = vmatprep.subr.bf16.mxu0 %v2265_v0 }
 0x55c   : > { %1873 = vmatpush3.bf16.msra.mxu0 %v2041_v11 }
 0x55d   : > { %1874 = vmatprep.subr.bf16.mxu0 %v2265_v0 }
 0x560   : > { %1875 = vmatpush3.bf16.msra.mxu0 %v2042_v12 }
 0x561   : > { %1876 = vmatprep.subr.bf16.mxu0 %v2265_v0  ;;  %v1617_v0 = vld [vmem:[%s2647_s6] ss:$0 sm:$0xff] }
 0x564   : > { %1877 = vmatpush3.bf16.msra.mxu0 %v2043_v13 }
 0x607   : > { %v1140_v2 = vpop.f32.mrf.mxu0 }
 0x608   : > { %v1141_v4 = vadd.f32 %v1598_v1, %v1140_v2 }
 0x609   : > { %v1840_v3 = vpop.f32.mrf.mxu0 }
 0x60a   : > { %v1147_v8 = vmax.f32 %v1141_v4, 0.0 }
 0x60b   : > { %v1143_v5 = vpop.f32.mrf.mxu0 }
 0x60c   : > { %v1144_v6 = vadd.f32 %v1598_v1, %v1143_v5 }
 0x60d   : > { %v1841_v7 = vpop.f32.mrf.mxu0 }
 0x60e   : > { %v1148_v9 = vmax.f32 %v1144_v6, 0.0 }
 0x610   : > { %v1149_v10 = vpack.c.bf16 %v1148_v9, %v1147_v8 }
 0x612   : > { %1859 = vmatmul.mubr.bf16.vlgmr.msra.gmra.mxu1 %v1149_v10 }
 0x6d2   : > { %v1257_v15 = vpop.f32.mrf.mxu1 }
 0x6d3   : > { %v1258_v17 = vadd.f32 %v1608_v14, %v1257_v15 }
 0x6d4   : > { %v1860_v16 = vpop.f32.mrf.mxu1 }
 0x6d5   : > { %v1264_v21 = vmax.f32 %v1258_v17, 0.0 }
 0x6d6   : > { %v1260_v18 = vpop.f32.mrf.mxu1 }
 0x6d7   : > { %v1261_v19 = vadd.f32 %v1608_v14, %v1260_v18 }
 0x6d8   : > { %v1861_v20 = vpop.f32.mrf.mxu1 }
 0x6d9   : > { %v1265_v22 = vmax.f32 %v1261_v19, 0.0 }
 0x6db   : > { %v1266_v23 = vpack.c.bf16 %v1265_v22, %v1264_v21 }
 0x6dd   : > { %1879 = vmatmul.mubr.bf16.vlgmr.msra.gmra.mxu0 %v1266_v23 }
 0x79d   : > { %v1372_v24 = vpop.f32.mrf.mxu0 }
 0x79e   : > { %v1373_v25 = vadd.f32 %v1617_v0, %v1372_v24 }
 0x79f   : > { %v1880_v26 = vpop.f32.mrf.mxu0 }
 0x7a0   : > { %1379 = vmax.xlane.f32.xlu0 %v1373_v25 }
 0x7a1   : > { %v1375_v27 = vpop.f32.mrf.mxu0 }
 0x7a2   : > { %v1376_v28 = vadd.f32 %v1617_v0, %v1375_v27 }
 0x7a3   : > { %v1881_v29 = vpop.f32.mrf.mxu0 }
 0x7a4   : > { %1381 = vmax.xlane.f32.xlu0 %v1376_v28 }
 0x829   : > { %v1380_v30 = vpop.xlane.xlu0 %1379 }
 0x82a   : > { %v1383_v31 = vsub.f32 %v1373_v25, %v1380_v30 }
 0x82c   : > { %v1385_v32 = vmul.f32 1.442695, %v1383_v31 }
 0x82d   : > { %v1382_v33 = vpop.xlane.xlu0 %1381 }
 0x82e   : > { %2044 = vpow2.f32 %v1385_v32  ;;  %v1384_v34 = vsub.f32 %v1376_v28, %v1382_v33 }
 0x830   : > { %v1387_v35 = vmul.f32 1.442695, %v1384_v34 }
 0x832   : > { %2046 = vpow2.f32 %v1387_v35 }
 0x83b   : > { %v2045_v36 = vpop.eup %2044 }
 0x83c   : > { %1389 = vadd.xlane.f32.xlu1 %v2045_v36 }
 0x83f   : > { %v2047_v37 = vpop.eup %2046 }
 0x840   : > { %1391 = vadd.xlane.f32.xlu1 %v2047_v37 }
 0x8c5   : > { %v1390_v38 = vpop.xlane.xlu1 %1389 }
 0x8c6   : > { %2048 = vrcp.f32 %v1390_v38 }
 0x8c9   : > { %v1392_v39 = vpop.xlane.xlu1 %1391 }
 0x8ca   : > { %2050 = vrcp.f32 %v1392_v39 }
 0x8d3   : > { %v2049_v40 = vpop.eup %2048 }
 0x8d4   : > { %v1394_v41 = vmul.f32 %v2049_v40, %v2045_v36 }
 0x8d6   : > { %1397 = vst [vmem:[%s352_s23] sm:$0xff] %v1394_v41 }
 0x8d7   : > { %v2051_v42 = vpop.eup %2050 }
 0x8d8   : > { %v1396_v43 = vmul.f32 %v2051_v42, %v2047_v37 }
 0x8da   : > { %1398 = vst [vmem:[%s352_s23 + $0x8] sm:$0xff] %v1396_v43 }
 0x8db   : > { %2197 = shalt.err (!%p2194_p3)
}
 0x8dc   : > { %s2198_s17 = scalar_lea.hbm %s2596_s15, 256  ;;  %s2202_s20 = scalar_lea.hbm %s2648_s7, 512 }
 0x8dd   : > { %p2199_p6 = scmp.ne.s32.totalorder %s2596_s15, %s2198_s17  ;;  %p2203_p9 = scmp.lt.s32.totalorder %s2596_s15, %s2648_s7 }
 0x8de   : > { %p2204_p11 = scmp.lt.s32.totalorder %s2202_s20, %s2198_s17 }
 0x8df   : > { %p2200_p4 = pnand %p2199_p6, %p2672_p12 }
 0x8e0   : > { %p2205_p0 = por %p2204_p11, %p2203_p9 }
 0x8e1   : > { %p2201_p8 = pneg %p2200_p4 }
 0x8e3   : > { %p2206_p2 = pnand %p2205_p0, %p2201_p8 }
 0x8e5   : > { %2209 = shalt.err (!%p2206_p2)
}
 0x8e6   : > { %s2268_s16 = smov 128   ;;  %s2269_s11 = smov 8  }
 0x8e7   : > { %1900 = dma.vmem_to_hbm [thread:$0]  (%p2672_p12), %s2598_s12, 256, %s2596_s15, %s1400_s18, %s2268_s16, %s2268_s16, %s2269_s11  }
 0x8e8 PF: > { %s1428_s14 = sand.u32 1, %s2244_s24   ;;  %p2673_p10 = scmp.ne.s32.totalorder %s2657_s8, 0 }
 0x8e9   : > { %p2674_p7 = scmp.ge.s32.totalorder %s2256_s27, 2  ;;  %s1429_s28 = scalar_lea.sflag [#allocation4], %s1428_s14 }
 0x8eb   : > { %p1920_p1 = pnand %p2674_p7, %p2673_p10 }
 0x8ed   : > { %p1921_p13 = pneg %p1920_p1 }
 0x8ef   : > { %2239 = dma.done.wait (%p1921_p13), %s1429_s28, 256  }
 0x8f0   : > { %2241 = vsyncadd (%p1921_p13), %s1429_s28, 4294967040  ;;  %p22_p5 = scmp.ge.s32.totalorder %s2407_s22, 4   ;;  %s2675_s24 = smov %s2248_s25 }
 0x8f1   : > { %s2676_s25 = smov %s2252_s26  ;;  %s2677_s26 = smov %s2423_s10 }
 0x8f2   : > { %s2678_s27 = smov %s2407_s22  ;;  %24 = sbr.rel (!%p22_p5) target bundleno = 9 (0x9), region = 121 }
 0x8f7   :  { %1434 = vsyncpa [#allocation3], 1 }
 0x8f8   :  { %1436 = vsyncpa [#allocation3 + $0x1], 1 }
 0x8f9   :  { %1437 = vsyncpa [#allocation6], 1 }
 0x8fa   :  { %1438 = vsyncpa [#allocation9], 1 }
 0x8fb   :  { %1439 = vsyncpa [#allocation4], 1 }
 0x8fc   :  { %1441 = vsyncpa [#allocation4 + $0x1], 1 }

</bundles_post_ra>
